<compile_context>
chip_gen: v5e
topology: v5e:2x2
jax: 0.10.0
libtpu: 0.0.40
codegen_flags: <defaults>
</compile_context>

<pallas_src>
import functools

import jax
import jax.numpy as jnp
from jax.experimental import pallas as pl
from jax.experimental.pallas import tpu as pltpu

LEAKY_SLOPE = 0.01  # torch.nn.LeakyReLU default


def _round_up(x: int, m: int) -> int:
    return (x + m - 1) // m * m


def _leaky_relu(x):
    # slope in (0, 1)  =>  max(x, slope * x) == LeakyReLU(x); single VPU max.
    return jnp.maximum(x, LEAKY_SLOPE * x)


def actor_kernel(x_ref, wi_ref, bi_ref, wh_ref, bh_ref, wo_ref, bo_ref, o_ref,
                 *, compute_dtype, precision):
    """One batch tile of the whole MLP (weights resident in VMEM, [in,out] layout)."""
    def dot(a, w_ref):
        # Canonical A @ W MXU form; f32 accumulation regardless of operand dtype.
        return jnp.dot(a, w_ref[...], preferred_element_type=jnp.float32,
                       precision=precision)

    x = x_ref[...]  # already compute_dtype (cast once in the wrapper)

    # input_layer + LeakyReLU (bias add / activation in f32)
    h = _leaky_relu(dot(x, wi_ref) + bi_ref[...])

    # hidden_layer (num_hidden = 1): Linear + LeakyReLU
    h = _leaky_relu(dot(h.astype(compute_dtype), wh_ref) + bh_ref[...])

    # output_layer + tanh (output lane dim is padded to a multiple of 128)
    out = dot(h.astype(compute_dtype), wo_ref) + bo_ref[...]
    o_ref[...] = jnp.tanh(out).astype(o_ref.dtype)


def prepare_actor_params(wi, bi, wh, bh, wo, bo, *, compute_dtype=jnp.bfloat16):
    """One-time conversion of PyTorch-layout params into kernel layout.

    Weights are transposed to [in, out] and cast to `compute_dtype` (bf16 by
    default) ONCE here, so the kernel never transposes or casts weights per
    grid step.  Biases become f32 [1, out]; the output layer is zero-padded so
    the output lane dimension is a multiple of 128 (lane-dense, unmasked
    stores).  Call this ONCE per weight update, never inside the per-step hot
    path.
    """
    num_output, hidden = wo.shape
    out_pad = _round_up(num_output, 128)

    wi_t = wi.T.astype(compute_dtype)                       # [num_input, hidden]
    wh_t = wh.T.astype(compute_dtype)                       # [hidden, hidden]
    wo_t = (jnp.zeros((hidden, out_pad), compute_dtype)
            .at[:, :num_output].set(wo.T.astype(compute_dtype)))  # [hidden, out_pad]

    bi_p = bi.astype(jnp.float32)[None, :]                  # [1, hidden]
    bh_p = bh.astype(jnp.float32)[None, :]                  # [1, hidden]
    bo_p = (jnp.zeros((1, out_pad), jnp.float32)
            .at[0, :num_output].set(bo.astype(jnp.float32)))  # [1, out_pad]
    return (wi_t, bi_p, wh_t, bh_p, wo_t, bo_p)


@functools.partial(jax.jit, static_argnames=("num_output",))
def actor_forward(x, params, *, num_output):
    """x: [B, num_input] (or [num_input]); params from prepare_actor_params."""
    if x.ndim < 2:
        x = x[None, :]  # mirror the torch `unsqueeze(0)` path

    wi, bi, wh, bh, wo, bo = params
    compute_dtype = wi.dtype
    num_input, hidden = wi.shape
    out_pad = wo.shape[1]
    B = x.shape[0]
    assert x.shape[1] == num_input

    # One cast at the boundary (no-op on the f32 path).
    x = x.astype(compute_dtype)

    # Batch tiling:
    #  * B <= 256: single grid step, batch dim at FULL extent (exempt from the
    #    (8,128) rule) -> no jnp.pad of x and no output row slice.
    #  * B > 256: TB=256 (TB=512 above 1024 rows) -> >=2 grid steps so the
    #    "parallel" axis can shard across both v7x TensorCores, while keeping
    #    per-step pipeline overhead (~0.35 us) amortized.
    B8 = _round_up(B, 8)
    if B8 <= 256:
        TB, B_pad = B, B
    else:
        TB = 256 if B8 <= 1024 else 512
        B_pad = _round_up(B8, TB)
        x = jnp.pad(x, ((0, B_pad - B), (0, 0)))

    # f32 operand path is the validation path -> force accurate MXU emulation.
    precision = (jax.lax.Precision.HIGHEST if compute_dtype == jnp.float32
                 else jax.lax.Precision.DEFAULT)

    kernel = functools.partial(actor_kernel,
                               compute_dtype=compute_dtype,
                               precision=precision)

    # Weights / biases stay resident in VMEM across all batch tiles.
    # TODO(synk): if hidden_size is ever scaled to ~4096+, Wh alone is 32 MiB in
    # bf16 (64 MiB f32 == all of v7x VMEM): K-tile Wh over a trailing reduction
    # grid axis marked "arbitrary" with an f32 VMEM accumulator scratch, mark
    # these constant-index specs pipeline_mode=pl.Buffered(1) so they are not
    # double-buffered, and raise vmem_limit_bytes only as needed.
    def resident(shape):
        return pl.BlockSpec(shape, lambda i: (0, 0))

    out = pl.pallas_call(
        kernel,
        out_shape=jax.ShapeDtypeStruct((B_pad, out_pad), jnp.float32),
        grid=(B_pad // TB,),
        in_specs=[
            pl.BlockSpec((TB, num_input), lambda i: (i, 0)),  # x: tiled over batch
            resident((num_input, hidden)),                    # Wi^T [in, hidden]
            resident((1, hidden)),                            # bi
            resident((hidden, hidden)),                       # Wh^T
            resident((1, hidden)),                            # bh
            resident((hidden, out_pad)),                      # Wo^T (out-padded)
            resident((1, out_pad)),                           # bo  (out-padded)
        ],
        out_specs=pl.BlockSpec((TB, out_pad), lambda i: (i, 0)),  # lane-dense output
        compiler_params=pltpu.CompilerParams(
            dimension_semantics=("parallel",),
        ),
    )(x, wi, bi, wh, bh, wo, bo)

    # Padded rows / lanes hold garbage / tanh(0)=0 and must never be consumed
    # directly; slice them away here.  Row slice only exists on the padded path.
    if B_pad == B:
        return out[:, :num_output]
    return out[:B, :num_output]


def init_actor_params(key, num_input, num_output, hidden_size):
    """Deterministic synthetic params in PyTorch Linear shapes: W[out,in], b[out]."""
    ks = jax.random.split(key, 6)
    scale_i = 1.0 / jnp.sqrt(num_input)
    scale_h = 1.0 / jnp.sqrt(hidden_size)
    wi = jax.random.uniform(ks[0], (hidden_size, num_input), jnp.float32, -scale_i, scale_i)
    bi = jax.random.uniform(ks[1], (hidden_size,), jnp.float32, -scale_i, scale_i)
    wh = jax.random.uniform(ks[2], (hidden_size, hidden_size), jnp.float32, -scale_h, scale_h)
    bh = jax.random.uniform(ks[3], (hidden_size,), jnp.float32, -scale_h, scale_h)
    wo = jax.random.uniform(ks[4], (num_output, hidden_size), jnp.float32, -scale_h, scale_h)
    bo = jax.random.uniform(ks[5], (num_output,), jnp.float32, -scale_h, scale_h)
    return wi, bi, wh, bh, wo, bo


if __name__ == "__main__":
    num_input, num_output, hidden_size = 16, 8, 256  # num_hidden=1 (module default)
    batch = 2

    key = jax.random.PRNGKey(0)
    k_x, k_p = jax.random.split(key)
    x = jax.random.normal(k_x, (batch, num_input), jnp.float32)

    raw_params = init_actor_params(k_p, num_input, num_output, hidden_size)

    # Pure-JAX f32 reference (HIGHEST-precision matmuls).
    wi, bi, wh, bh, wo, bo = raw_params
    hp = jax.lax.Precision.HIGHEST
    h = jnp.dot(x, wi.T, precision=hp) + bi
    h = jnp.where(h >= 0, h, LEAKY_SLOPE * h)
    h = jnp.dot(h, wh.T, precision=hp) + bh
    h = jnp.where(h >= 0, h, LEAKY_SLOPE * h)
    ref = jnp.tanh(jnp.dot(h, wo.T, precision=hp) + bo)

    # Default (performance) path: bf16 operands, f32 accumulation -> looser tol.
    params_bf16 = prepare_actor_params(*raw_params)  # one-time layout/dtype prep
    y = actor_forward(x, params_bf16, num_output=num_output)
    jax.block_until_ready(y)
    assert y.shape == (batch, num_output)
    assert jnp.allclose(y, ref, atol=5e-2), float(jnp.max(jnp.abs(y - ref)))

    # f32 operand path: tight-tolerance check of the kernel logic.
    params_f32 = prepare_actor_params(*raw_params, compute_dtype=jnp.float32)
    y32 = actor_forward(x, params_f32, num_output=num_output)
    jax.block_until_ready(y32)
    assert y32.shape == (batch, num_output)
    assert jnp.allclose(y32, ref, atol=1e-4), float(jnp.max(jnp.abs(y32 - ref)))

    # 1-D input path (mirrors torch's unsqueeze(0)).
    y1 = actor_forward(x[0], params_bf16, num_output=num_output)
    jax.block_until_ready(y1)
    assert y1.shape == (1, num_output)
    assert jnp.allclose(y1, y[:1], atol=1e-6)

    print("KERNEL_OK")
</pallas_src>

<mosaic_0001>
module attributes {stable_mosaic.version = 11 : i64} {
  func.func @actor_kernel(%arg0: i32, %arg1: memref<2x16xbf16, #tpu.memory_space<vmem>>, %arg2: memref<16x256xbf16, #tpu.memory_space<vmem>>, %arg3: memref<1x256xf32, #tpu.memory_space<vmem>>, %arg4: memref<256x256xbf16, #tpu.memory_space<vmem>>, %arg5: memref<1x256xf32, #tpu.memory_space<vmem>>, %arg6: memref<256x128xbf16, #tpu.memory_space<vmem>>, %arg7: memref<1x128xf32, #tpu.memory_space<vmem>>, %arg8: memref<2x128xf32, #tpu.memory_space<vmem>>) attributes {dimension_semantics = [#tpu.dimension_semantics<parallel>], iteration_bounds = array<i64: 1>, scalar_prefetch = 0 : i64, scratch_operands = 0 : i64, tpu.core_type = #tpu.core_type<tc>, window_params = [{transform_indices = @transform_0, window_bounds = array<i64: 2, 16>}, {pipeline_mode = #tpu.pipeline_mode<synchronous>, transform_indices = @transform_1, window_bounds = array<i64: 16, 256>}, {pipeline_mode = #tpu.pipeline_mode<synchronous>, transform_indices = @transform_2, window_bounds = array<i64: 1, 256>}, {pipeline_mode = #tpu.pipeline_mode<synchronous>, transform_indices = @transform_3, window_bounds = array<i64: 256, 256>}, {pipeline_mode = #tpu.pipeline_mode<synchronous>, transform_indices = @transform_4, window_bounds = array<i64: 1, 256>}, {pipeline_mode = #tpu.pipeline_mode<synchronous>, transform_indices = @transform_5, window_bounds = array<i64: 256, 128>}, {pipeline_mode = #tpu.pipeline_mode<synchronous>, transform_indices = @transform_6, window_bounds = array<i64: 1, 128>}, {transform_indices = @transform_7, window_bounds = array<i64: 2, 128>}]} {
    %c0 = arith.constant 0 : index
    %c0_0 = arith.constant 0 : index
    %0 = vector.load %arg1[%c0, %c0_0] : memref<2x16xbf16, #tpu.memory_space<vmem>>, vector<2x16xbf16>
    %c0_1 = arith.constant 0 : index
    %c0_2 = arith.constant 0 : index
    %1 = vector.load %arg2[%c0_1, %c0_2] : memref<16x256xbf16, #tpu.memory_space<vmem>>, vector<16x256xbf16>
    %cst = arith.constant dense<0.000000e+00> : vector<2x256xf32>
    %2 = tpu.matmul %0, %1, %cst {dimension_numbers = #tpu.dot_dimension_numbers<[1], [0], [0], [1], [0, 0, 1, 1], [], []>} : vector<2x16xbf16>, vector<16x256xbf16>, vector<2x256xf32> -> vector<2x256xf32>
    %c0_3 = arith.constant 0 : index
    %c0_4 = arith.constant 0 : index
    %3 = vector.load %arg3[%c0_3, %c0_4] : memref<1x256xf32, #tpu.memory_space<vmem>>, vector<1x256xf32>
    %4 = vector.broadcast %3 : vector<1x256xf32> to vector<2x256xf32>
    %5 = arith.addf %2, %4 : vector<2x256xf32>
    %cst_5 = arith.constant 0.00999999977 : f32
    %6 = vector.broadcast %cst_5 : f32 to vector<2x256xf32>
    %7 = arith.mulf %6, %5 : vector<2x256xf32>
    %8 = arith.maximumf %5, %7 : vector<2x256xf32>
    %9 = arith.truncf %8 : vector<2x256xf32> to vector<2x256xbf16>
    %c0_6 = arith.constant 0 : index
    %c0_7 = arith.constant 0 : index
    %10 = vector.load %arg4[%c0_6, %c0_7] : memref<256x256xbf16, #tpu.memory_space<vmem>>, vector<256x256xbf16>
    %cst_8 = arith.constant dense<0.000000e+00> : vector<2x256xf32>
    %11 = tpu.matmul %9, %10, %cst_8 {dimension_numbers = #tpu.dot_dimension_numbers<[1], [0], [0], [1], [0, 0, 1, 1], [], []>} : vector<2x256xbf16>, vector<256x256xbf16>, vector<2x256xf32> -> vector<2x256xf32>
    %c0_9 = arith.constant 0 : index
    %c0_10 = arith.constant 0 : index
    %12 = vector.load %arg5[%c0_9, %c0_10] : memref<1x256xf32, #tpu.memory_space<vmem>>, vector<1x256xf32>
    %13 = vector.broadcast %12 : vector<1x256xf32> to vector<2x256xf32>
    %14 = arith.addf %11, %13 : vector<2x256xf32>
    %cst_11 = arith.constant 0.00999999977 : f32
    %15 = vector.broadcast %cst_11 : f32 to vector<2x256xf32>
    %16 = arith.mulf %15, %14 : vector<2x256xf32>
    %17 = arith.maximumf %14, %16 : vector<2x256xf32>
    %18 = arith.truncf %17 : vector<2x256xf32> to vector<2x256xbf16>
    %c0_12 = arith.constant 0 : index
    %c0_13 = arith.constant 0 : index
    %19 = vector.load %arg6[%c0_12, %c0_13] : memref<256x128xbf16, #tpu.memory_space<vmem>>, vector<256x128xbf16>
    %cst_14 = arith.constant dense<0.000000e+00> : vector<2x128xf32>
    %20 = tpu.matmul %18, %19, %cst_14 {dimension_numbers = #tpu.dot_dimension_numbers<[1], [0], [0], [1], [0, 0, 1, 1], [], []>} : vector<2x256xbf16>, vector<256x128xbf16>, vector<2x128xf32> -> vector<2x128xf32>
    %c0_15 = arith.constant 0 : index
    %c0_16 = arith.constant 0 : index
    %21 = vector.load %arg7[%c0_15, %c0_16] : memref<1x128xf32, #tpu.memory_space<vmem>>, vector<1x128xf32>
    %22 = vector.broadcast %21 : vector<1x128xf32> to vector<2x128xf32>
    %23 = arith.addf %20, %22 : vector<2x128xf32>
    %24 = math.tanh %23 : vector<2x128xf32>
    %c0_17 = arith.constant 0 : index
    %c0_18 = arith.constant 0 : index
    %25 = vector.load %arg8[%c0_17, %c0_18] : memref<2x128xf32, #tpu.memory_space<vmem>>, vector<2x128xf32>
    tpu.vector_store %arg8[%c0_17, %c0_18], %24 {strides = array<i32>} : memref<2x128xf32, #tpu.memory_space<vmem>>, vector<2x128xf32>,
    return
  }
  func.func @transform_0(%arg0: i32) -> (i32, i32) {
    %c0_i32 = arith.constant 0 : i32
    %c0_i32_0 = arith.constant 0 : i32
    return %arg0, %c0_i32 : i32, i32
  }
  func.func @transform_1(%arg0: i32) -> (i32, i32) {
    %c0_i32 = arith.constant 0 : i32
    %c0_i32_0 = arith.constant 0 : i32
    %c0_i32_1 = arith.constant 0 : i32
    return %c0_i32, %c0_i32_0 : i32, i32
  }
  func.func @transform_2(%arg0: i32) -> (i32, i32) {
    %c0_i32 = arith.constant 0 : i32
    %c0_i32_0 = arith.constant 0 : i32
    %c0_i32_1 = arith.constant 0 : i32
    return %c0_i32, %c0_i32_0 : i32, i32
  }
  func.func @transform_3(%arg0: i32) -> (i32, i32) {
    %c0_i32 = arith.constant 0 : i32
    %c0_i32_0 = arith.constant 0 : i32
    %c0_i32_1 = arith.constant 0 : i32
    return %c0_i32, %c0_i32_0 : i32, i32
  }
  func.func @transform_4(%arg0: i32) -> (i32, i32) {
    %c0_i32 = arith.constant 0 : i32
    %c0_i32_0 = arith.constant 0 : i32
    %c0_i32_1 = arith.constant 0 : i32
    return %c0_i32, %c0_i32_0 : i32, i32
  }
  func.func @transform_5(%arg0: i32) -> (i32, i32) {
    %c0_i32 = arith.constant 0 : i32
    %c0_i32_0 = arith.constant 0 : i32
    %c0_i32_1 = arith.constant 0 : i32
    return %c0_i32, %c0_i32_0 : i32, i32
  }
  func.func @transform_6(%arg0: i32) -> (i32, i32) {
    %c0_i32 = arith.constant 0 : i32
    %c0_i32_0 = arith.constant 0 : i32
    %c0_i32_1 = arith.constant 0 : i32
    return %c0_i32, %c0_i32_0 : i32, i32
  }
  func.func @transform_7(%arg0: i32) -> (i32, i32) {
    %c0_i32 = arith.constant 0 : i32
    %c0_i32_0 = arith.constant 0 : i32
    return %arg0, %c0_i32 : i32, i32
  }
}

</mosaic_0001>

<bundles_post_ra>
// kernel: actor_forward.1
= control target key start
LH: loop header
LB: loop body
LE: loop exit
PB: predicated region body
PF: predicated region fallthrough
CT: control target
= control target key end

     0   :  { %12 = vsyncpa [#allocation3], 0  ;;  %s1003_s0 = inlined_call_operand.vmem [shape: bf16[2,16], index: 0, kind: input, shape index: {}]   ;;  %s1004_s1 = inlined_call_operand.hbm [shape: bf16[16,256], index: 1, kind: input, shape index: {}]   ;;  %s1005_s2 = inlined_call_operand.vmem [shape: f32[1,256], index: 2, kind: input, shape index: {}]   ;;  %s1006_s3 = inlined_call_operand.hbm [shape: bf16[256,256], index: 3, kind: input, shape index: {}]   ;;  %s1007_s4 = inlined_call_operand.vmem [shape: f32[1,256], index: 4, kind: input, shape index: {}]   ;;  %s1008_s5 = inlined_call_operand.hbm [shape: bf16[256,128], index: 5, kind: input, shape index: {}]   ;;  %s1009_s6 = inlined_call_operand.vmem [shape: f32[1,128], index: 6, kind: input, shape index: {}]   ;;  %s1010_s7 = inlined_call_operand.hbm [shape: f32[2,128], index: 7, kind: output, shape index: {}]  }
   0x1   :  { %13 = vsyncpa [#allocation6], 0 }
   0x2   :  { %14 = vsyncpa [#allocation4], 0  ;;  %s36_s26 = sshll.u32 %s1006_s3, 4  ;;  %s929_s27 = smov [#allocation5]   ;;  %s37_s26 = int_to_ptr.hbm [resolvable:$true] %s36_s26 }
   0x3   :  { %s38_s28 = sshll.u32 %s929_s27, 4  ;;  %s21_s8 = sshll.u32 %s1004_s1, 4  ;;  %s39_s28 = int_to_ptr.vmem [resolvable:$true] %s38_s28  ;;  %s22_s8 = int_to_ptr.hbm [resolvable:$true] %s21_s8 }
   0x4   :  { %s930_s9 = smov 128   ;;  %s931_s10 = smov 8  }
   0x5   :  { %44 = dma.hbm_to_vmem [thread:$0]  %s37_s26, 4096, %s39_s28, [#allocation6], %s930_s9, %s930_s9, %s931_s10  }
   0x6   :  { %s932_s11 = smov [#allocation2]   ;;  %s51_s15 = sshll.u32 %s1008_s5, 4  ;;  %s52_s15 = int_to_ptr.hbm [resolvable:$true] %s51_s15 }
   0x7   :  { %s23_s12 = sshll.u32 %s932_s11, 4  ;;  %s933_s3 = smov [#allocation7]   ;;  %s24_s12 = int_to_ptr.vmem [resolvable:$true] %s23_s12 }
   0x8   :  { %29 = dma.hbm_to_vmem [thread:$0]  %s22_s8, 256, %s24_s12, [#allocation3], %s930_s9, %s930_s9, %s931_s10  }
   0x9   :  { %s53_s16 = sshll.u32 %s933_s3, 4  ;;  %s934_s17 = smov 64   ;;  %s54_s16 = int_to_ptr.vmem [resolvable:$true] %s53_s16 }
   0xa   :  { %s935_s18 = smov 4  }
   0xb   :  { %59 = dma.hbm_to_vmem [thread:$0]  %s52_s15, 2048, %s54_s16, [#allocation6], %s934_s17, %s934_s17, %s935_s18  }
   0xc   :  { %923 = dma.done.wait [#allocation3], 256  }
   0xd   :  { %924 = vsyncadd [#allocation3], 4294967040 }
   0xe   :  { %925 = dma.done.wait [#allocation6], 6144  }
   0xf   :  { %926 = vsyncadd [#allocation6], 4294961152  ;;  %vm94_vm0 = vcmask 130048   ;;  %v566_v0 = vld [vmem:[#allocation2] sm:$0xf]  ;;  %s936_s22 = smov [#allocation8]  }
  0x10   :  { %v767_v1 = vld [vmem:[#allocation2 + $0x4] sm:$0xf0]  ;;  %v766_v2 = vld [vmem:[#allocation2 + $0x4] sm:$0xf]  ;;  %v568_v4 = vld [vmem:[#allocation2 + $0x8] sm:$0xf0] }
  0x11   :  { %v567_v3 = vor.u32 %v767_v1, %v566_v0  ;;  %v75_v5 = vld [vmem:[%s1003_s0] sm:$0x1]  ;;  %v571_v7 = vor.u32 %v766_v2, %v568_v4  ;;  %v783_v8 = vld [vmem:[#allocation5 + $0x74] sm:$0xf0]  ;;  %v782_v13 = vld [vmem:[#allocation5 + $0x74] sm:$0xf] }
  0x12   :  { %v632_v6 = vld [vmem:[#allocation5 + $0x70] sm:$0xf]  ;;  %v799_v10 = vld [vmem:[#allocation5 + $0xf4] sm:$0xf0]  ;;  %v634_v14 = vld [vmem:[#allocation5 + $0x78] sm:$0xf0] }
  0x13   :  { %v696_v9 = vld [vmem:[#allocation5 + $0xf0] sm:$0xf]  ;;  %105 = vmatpush.bf16.msra.mxu0 %v567_v3  ;;  %v633_v11 = vor.u32 %v783_v8, %v632_v6  ;;  %v798_v15 = vld [vmem:[#allocation5 + $0xf4] sm:$0xf]  ;;  %118 = vmatpush.bf16.msra.mxu1 %v571_v7  ;;  %v637_v16 = vor.u32 %v782_v13, %v634_v14  ;;  %v698_v17 = vld [vmem:[#allocation5 + $0xf8] sm:$0xf0] }
  0x14   :  { %v697_v12 = vor.u32 %v799_v10, %v696_v9  ;;  %v624_v18 = vld [vmem:[#allocation5 + $0x60] sm:$0xf]  ;;  %v781_v19 = vld [vmem:[#allocation5 + $0x64] sm:$0xf0]  ;;  %v701_v20 = vor.u32 %v798_v15, %v698_v17  ;;  %v780_v24 = vld [vmem:[#allocation5 + $0x64] sm:$0xf] }
  0x15   :  { %328 = vmatpush.bf16.msra.mxu2 %v633_v11  ;;  %v625_v21 = vor.u32 %v781_v19, %v624_v18  ;;  %v688_v22 = vld [vmem:[#allocation5 + $0xe0] sm:$0xf]  ;;  %v797_v23 = vld [vmem:[#allocation5 + $0xe4] sm:$0xf0]  ;;  %v626_v26 = vld [vmem:[#allocation5 + $0x68] sm:$0xf0] }
  0x16   :  { %341 = vmatpush.bf16.msra.mxu3 %v697_v12  ;;  %572 = vmatmul.msk.bf16.vlgmr.msra.gmra.mxu0 %vm94_vm0, %v75_v5  ;;  %v689_v25 = vor.u32 %v797_v23, %v688_v22  ;;  %v796_v27 = vld [vmem:[#allocation5 + $0xe4] sm:$0xf]  ;;  %v690_v28 = vld [vmem:[#allocation5 + $0xe8] sm:$0xf0]  ;;  %v629_v29 = vor.u32 %v780_v24, %v626_v26  ;;  %v616_v30 = vld [vmem:[#allocation5 + $0x50] sm:$0xf] }
  0x17   :  { %573 = vmatmul.msk.bf16.vlgmr.msra.gmra.mxu1 %vm94_vm0, %v75_v5  ;;  %354 = vmatpush.bf16.msrb.mxu0 %v637_v16  ;;  %v779_v31 = vld [vmem:[#allocation5 + $0x54] sm:$0xf0]  ;;  %v680_v32 = vld [vmem:[#allocation5 + $0xd0] sm:$0xf]  ;;  %v693_v33 = vor.u32 %v796_v27, %v690_v28  ;;  %v778_v35 = vld [vmem:[#allocation5 + $0x54] sm:$0xf] }
  0x18   :  { %367 = vmatpush.bf16.msrb.mxu1 %v701_v20  ;;  %v795_v34 = vld [vmem:[#allocation5 + $0xd4] sm:$0xf0]  ;;  %v618_v36 = vld [vmem:[#allocation5 + $0x58] sm:$0xf0]  ;;  %v617_v37 = vor.u32 %v779_v31, %v616_v30  ;;  %v794_v39 = vld [vmem:[#allocation5 + $0xd4] sm:$0xf] }
  0x19   :  { %329 = vmatpush.bf16.msra.mxu2 %v625_v21  ;;  %v681_v38 = vor.u32 %v795_v34, %v680_v32  ;;  %v682_v40 = vld [vmem:[#allocation5 + $0xd8] sm:$0xf0]  ;;  %v608_v41 = vld [vmem:[#allocation5 + $0x40] sm:$0xf]  ;;  %v777_v42 = vld [vmem:[#allocation5 + $0x44] sm:$0xf0]  ;;  %v621_v45 = vor.u32 %v778_v35, %v618_v36 }
  0x1a   :  { %342 = vmatpush.bf16.msra.mxu3 %v689_v25  ;;  %v672_v43 = vld [vmem:[#allocation5 + $0xc0] sm:$0xf]  ;;  %v793_v44 = vld [vmem:[#allocation5 + $0xc4] sm:$0xf0]  ;;  %v685_v46 = vor.u32 %v794_v39, %v682_v40  ;;  %v776_v47 = vld [vmem:[#allocation5 + $0x44] sm:$0xf]  ;;  %v609_v49 = vor.u32 %v777_v42, %v608_v41 }
  0x1b   :  { %355 = vmatpush.bf16.msrb.mxu0 %v629_v29  ;;  %v610_v48 = vld [vmem:[#allocation5 + $0x48] sm:$0xf0]  ;;  %v673_v50 = vor.u32 %v793_v44, %v672_v43  ;;  %v792_v51 = vld [vmem:[#allocation5 + $0xc4] sm:$0xf]  ;;  %v600_v53 = vld [vmem:[#allocation5 + $0x30] sm:$0xf] }
  0x1c   :  { %368 = vmatpush.bf16.msrb.mxu1 %v693_v33  ;;  %v674_v52 = vld [vmem:[#allocation5 + $0xc8] sm:$0xf0]  ;;  %v775_v54 = vld [vmem:[#allocation5 + $0x34] sm:$0xf0]  ;;  %v664_v55 = vld [vmem:[#allocation5 + $0xb0] sm:$0xf]  ;;  %v613_v57 = vor.u32 %v776_v47, %v610_v48 }
  0x1d   :  { %330 = vmatpush.bf16.msra.mxu2 %v617_v37  ;;  %v791_v56 = vld [vmem:[#allocation5 + $0xb4] sm:$0xf0]  ;;  %v677_v58 = vor.u32 %v792_v51, %v674_v52  ;;  %v774_v59 = vld [vmem:[#allocation5 + $0x34] sm:$0xf]  ;;  %v602_v60 = vld [vmem:[#allocation5 + $0x38] sm:$0xf0]  ;;  %v601_v62 = vor.u32 %v775_v54, %v600_v53 }
  0x1e   :  { %343 = vmatpush.bf16.msra.mxu3 %v681_v38  ;;  %v790_v61 = vld [vmem:[#allocation5 + $0xb4] sm:$0xf]  ;;  %v665_v63 = vor.u32 %v791_v56, %v664_v55  ;;  %v666_v0 = vld [vmem:[#allocation5 + $0xb8] sm:$0xf0]  ;;  %v592_v1 = vld [vmem:[#allocation5 + $0x20] sm:$0xf]  ;;  %v605_v5 = vor.u32 %v774_v59, %v602_v60 }
  0x1f   :  { %356 = vmatpush.bf16.msrb.mxu0 %v621_v45  ;;  %v773_v2 = vld [vmem:[#allocation5 + $0x24] sm:$0xf0]  ;;  %v656_v3 = vld [vmem:[#allocation5 + $0xa0] sm:$0xf]  ;;  %v669_v6 = vor.u32 %v790_v61, %v666_v0  ;;  %v772_v7 = vld [vmem:[#allocation5 + $0x24] sm:$0xf] }
  0x20   :  { %369 = vmatpush.bf16.msrb.mxu1 %v685_v46  ;;  %v789_v4 = vld [vmem:[#allocation5 + $0xa4] sm:$0xf0]  ;;  %v594_v8 = vld [vmem:[#allocation5 + $0x28] sm:$0xf0]  ;;  %v593_v9 = vor.u32 %v773_v2, %v592_v1  ;;  %v788_v11 = vld [vmem:[#allocation5 + $0xa4] sm:$0xf] }
  0x21   :  { %331 = vmatpush.bf16.msra.mxu2 %v609_v49  ;;  %v657_v10 = vor.u32 %v789_v4, %v656_v3  ;;  %v658_v12 = vld [vmem:[#allocation5 + $0xa8] sm:$0xf0]  ;;  %v597_v13 = vor.u32 %v772_v7, %v594_v8  ;;  %v584_v15 = vld [vmem:[#allocation5 + $0x10] sm:$0xf]  ;;  %v771_v16 = vld [vmem:[#allocation5 + $0x14] sm:$0xf0] }
  0x22   :  { %344 = vmatpush.bf16.msra.mxu3 %v673_v50  ;;  %v661_v14 = vor.u32 %v788_v11, %v658_v12  ;;  %v585_v17 = vor.u32 %v771_v16, %v584_v15  ;;  %v648_v18 = vld [vmem:[#allocation5 + $0x90] sm:$0xf]  ;;  %v787_v19 = vld [vmem:[#allocation5 + $0x94] sm:$0xf0]  ;;  %v770_v20 = vld [vmem:[#allocation5 + $0x14] sm:$0xf] }
  0x23   :  { %357 = vmatpush.bf16.msrb.mxu0 %v613_v57  ;;  %v649_v21 = vor.u32 %v787_v19, %v648_v18  ;;  %v586_v22 = vld [vmem:[#allocation5 + $0x18] sm:$0xf0]  ;;  %v786_v23 = vld [vmem:[#allocation5 + $0x94] sm:$0xf]  ;;  %v576_v27 = vld [vmem:[#allocation5] sm:$0xf] }
  0x24   :  { %370 = vmatpush.bf16.msrb.mxu1 %v677_v58  ;;  %v650_v24 = vld [vmem:[#allocation5 + $0x98] sm:$0xf0]  ;;  %v589_v25 = vor.u32 %v770_v20, %v586_v22  ;;  %v769_v28 = vld [vmem:[#allocation5 + $0x4] sm:$0xf0]  ;;  %v640_v29 = vld [vmem:[#allocation5 + $0x80] sm:$0xf] }
  0x25   :  { %332 = vmatpush.bf16.msra.mxu2 %v601_v62  ;;  %v653_v26 = vor.u32 %v786_v23, %v650_v24  ;;  %v577_v30 = vor.u32 %v769_v28, %v576_v27  ;;  %v785_v31 = vld [vmem:[#allocation5 + $0x84] sm:$0xf0]  ;;  %v768_v32 = vld [vmem:[#allocation5 + $0x4] sm:$0xf]  ;;  %v578_v33 = vld [vmem:[#allocation5 + $0x8] sm:$0xf0] }
  0x26   :  { %345 = vmatpush.bf16.msra.mxu3 %v665_v63  ;;  %v641_v34 = vor.u32 %v785_v31, %v640_v29  ;;  %v581_v35 = vor.u32 %v768_v32, %v578_v33  ;;  %v784_v36 = vld [vmem:[#allocation5 + $0x84] sm:$0xf]  ;;  %v642_v37 = vld [vmem:[#allocation5 + $0x88] sm:$0xf0]  ;;  %v815_v39 = vld [vmem:[#allocation7 + $0x78] sm:$0xff]  ;;  %s551_s23 = sshll.u32 %s936_s22, 4  ;;  %s552_s23 = int_to_ptr.vmem [resolvable:$true] %s551_s23 }
  0x27   :  { %358 = vmatpush.bf16.msrb.mxu0 %v605_v5  ;;  %v645_v38 = vor.u32 %v784_v36, %v642_v37  ;;  %v807_v40 = vld [vmem:[#allocation7 + $0x38] sm:$0xff]  ;;  %v814_v41 = vld [vmem:[#allocation7 + $0x70] sm:$0xff]  ;;  %v813_v43 = vld [vmem:[#allocation7 + $0x68] sm:$0xff]  ;;  %s553_s26 = sshll.u32 %s1010_s7, 4  ;;  %s554_s26 = int_to_ptr.hbm [resolvable:$true] %s553_s26 }
  0x28   :  { %371 = vmatpush.bf16.msrb.mxu1 %v669_v6  ;;  %v806_v42 = vld [vmem:[#allocation7 + $0x30] sm:$0xff]  ;;  %v805_v44 = vld [vmem:[#allocation7 + $0x28] sm:$0xff]  ;;  %v812_v45 = vld [vmem:[#allocation7 + $0x60] sm:$0xff] }
  0x29   :  { %333 = vmatpush.bf16.msra.mxu2 %v593_v9  ;;  %v804_v46 = vld [vmem:[#allocation7 + $0x20] sm:$0xff]  ;;  %v811_v47 = vld [vmem:[#allocation7 + $0x58] sm:$0xff]  ;;  %v78_v48 = vld [vmem:[%s1005_s2] sm:$0x3] }
  0x2a   :  { %346 = vmatpush.bf16.msra.mxu3 %v657_v10  ;;  %v80_v49 = vperm.slane %v78_v48, 0  ;;  %v81_v50 = vperm.slane %v78_v48, 1  ;;  %v810_v63 = vld [vmem:[#allocation7 + $0x50] sm:$0xff]  ;;  %v803_v0 = vld [vmem:[#allocation7 + $0x18] sm:$0xff]  ;;  %v809_v1 = vld [vmem:[#allocation7 + $0x48] sm:$0xff] }
  0x2b   :  { %359 = vmatpush.bf16.msrb.mxu0 %v597_v13  ;;  %v802_v2 = vld [vmem:[#allocation7 + $0x10] sm:$0xff]  ;;  %v808_v3 = vld [vmem:[#allocation7 + $0x40] sm:$0xff]  ;;  %v801_v4 = vld [vmem:[#allocation7 + $0x8] sm:$0xff] }
  0x2c   :  { %372 = vmatpush.bf16.msrb.mxu1 %v661_v14  ;;  %v800_v5 = vld [vmem:[#allocation7] sm:$0xff]  ;;  %v162_v6 = vld [vmem:[%s1007_s4] sm:$0x3] }
  0x2d   :  { %334 = vmatpush.bf16.msra.mxu2 %v585_v17  ;;  %v165_v7 = vperm.slane %v162_v6, 1  ;;  %v164_v12 = vperm.slane %v162_v6, 0  ;;  %v824_v28 = vld [vmem:[%s1009_s6] ss:$0 sm:$0xff] }
  0x2e   :  { %347 = vmatpush.bf16.msra.mxu3 %v649_v21 }
  0x2f   :  { %360 = vmatpush.bf16.msrb.mxu0 %v589_v25 }
  0x30   :  { %373 = vmatpush.bf16.msrb.mxu1 %v653_v26 }
  0x31   :  { %335 = vmatpush.bf16.msra.mxu2 %v577_v30 }
  0x32   :  { %348 = vmatpush.bf16.msra.mxu3 %v641_v34 }
  0x33   :  { %361 = vmatpush.bf16.msrb.mxu0 %v581_v35 }
  0x34   :  { %374 = vmatpush.bf16.msrb.mxu1 %v645_v38 }
  0x35   :  { %518 = vmatpush.bf16.msrb.mxu2 %v807_v40 }
  0x36   :  { %531 = vmatpush.bf16.msrb.mxu3 %v815_v39 }
  0x39   :  { %519 = vmatpush.bf16.msrb.mxu2 %v806_v42 }
  0x3a   :  { %532 = vmatpush.bf16.msrb.mxu3 %v814_v41 }
  0x3d   :  { %520 = vmatpush.bf16.msrb.mxu2 %v805_v44 }
  0x3e   :  { %533 = vmatpush.bf16.msrb.mxu3 %v813_v43 }
  0x41   :  { %521 = vmatpush.bf16.msrb.mxu2 %v804_v46 }
  0x42   :  { %534 = vmatpush.bf16.msrb.mxu3 %v812_v45 }
  0x45   :  { %522 = vmatpush.bf16.msrb.mxu2 %v803_v0 }
  0x46   :  { %535 = vmatpush.bf16.msrb.mxu3 %v811_v47 }
  0x49   :  { %523 = vmatpush.bf16.msrb.mxu2 %v802_v2 }
  0x4a   :  { %536 = vmatpush.bf16.msrb.mxu3 %v810_v63 }
  0x4d   :  { %524 = vmatpush.bf16.msrb.mxu2 %v801_v4 }
  0x4e   :  { %537 = vmatpush.bf16.msrb.mxu3 %v809_v1 }
  0x51   :  { %525 = vmatpush.bf16.msrb.mxu2 %v800_v5 }
  0x52   :  { %538 = vmatpush.bf16.msrb.mxu3 %v808_v3 }
  0x93   :  { %v107_v51 = vpop.f32.mrf.mxu0 }
  0x94   :  { %v108_v52 = vadd.f32 %v107_v51, %v80_v49  ;;  %v120_v53 = vpop.f32.mrf.mxu1 }
  0x95   :  { %v121_v54 = vadd.f32 %v120_v53, %v81_v50 }
  0x96   :  { %v124_v55 = vmul.f32 0.01, %v108_v52 }
  0x97   :  { %v125_v56 = vmul.f32 0.01, %v121_v54 }
  0x98   :  { %v126_v57 = vmax.f32 %v108_v52, %v124_v55 }
  0x99   :  { %v127_v58 = vmax.f32 %v121_v54, %v125_v56 }
  0x9a   :  { %v128_v59 = vpack.c.bf16 %v126_v57, %v126_v57 }
  0x9b   :  { %v109_v60 = vpop.f32.mrf.mxu0  ;;  %v129_v61 = vpack.c.bf16 %v127_v58, %v127_v58 }
  0x9c   :  { %v122_v62 = vpop.f32.mrf.mxu1  ;;  %336 = vmatmul.bf16.vlgmr.msra.gmra.mxu2 %v128_v59  ;;  %362 = vmatmul.bf16.vlgmr.msrb.gmra.mxu0 %v128_v59 }
  0x9d   :  { %349 = vmatmul.bf16.vlgmr.msra.gmra.mxu3 %v129_v61  ;;  %375 = vmatmul.bf16.vlgmr.msrb.gmra.mxu1 %v129_v61 }
 0x119   :  { %v363_v8 = vpop.f32.mrf.mxu0 }
 0x11a   :  { %v364_v9 = vadd.f32 %v363_v8, %v165_v7  ;;  %v376_v10 = vpop.f32.mrf.mxu1 }
 0x11c   :  { %v377_v11 = vadd.f32 %v376_v10, %v364_v9 }
 0x11e   :  { %v381_v13 = vmul.f32 0.01, %v377_v11 }
 0x11f   :  { %v337_v14 = vpop.f32.mrf.mxu2 }
 0x120   :  { %v383_v15 = vmax.f32 %v377_v11, %v381_v13  ;;  %v338_v16 = vadd.f32 %v337_v14, %v164_v12  ;;  %v350_v17 = vpop.f32.mrf.mxu3 }
 0x121   :  { %v365_v18 = vpop.f32.mrf.mxu0 }
 0x122   :  { %v385_v19 = vpack.c.bf16 %v383_v15, %v383_v15  ;;  %v351_v20 = vadd.f32 %v350_v17, %v338_v16  ;;  %v378_v21 = vpop.f32.mrf.mxu1 }
 0x124   :  { %v380_v22 = vmul.f32 0.01, %v351_v20  ;;  %539 = vmatmul.bf16.vlgmr.msrb.gmra.mxu3 %v385_v19 }
 0x126   :  { %v382_v23 = vmax.f32 %v351_v20, %v380_v22 }
 0x127   :  { %v339_v24 = vpop.f32.mrf.mxu2 }
 0x128   :  { %v384_v25 = vpack.c.bf16 %v382_v23, %v382_v23  ;;  %v352_v26 = vpop.f32.mrf.mxu3 }
 0x12a   :  { %526 = vmatmul.bf16.vlgmr.msrb.gmra.mxu2 %v384_v25 }
 0x1a7   :  { %v540_v27 = vpop.f32.mrf.mxu3 }
 0x1ad   :  { %v527_v29 = vpop.f32.mrf.mxu2 }
 0x1ae   :  { %v528_v30 = vadd.f32 %v824_v28, %v527_v29 }
 0x1af   :  { %v542_v31 = vpop.f32.mrf.mxu3 }
 0x1b0   :  { %v541_v32 = vadd.f32 %v540_v27, %v528_v30 }
 0x1b2   :  { %825 = vtanh.f32 %v541_v32 }
 0x1b5   :  { %v529_v33 = vpop.f32.mrf.mxu2 }
 0x1b8   :  { %v826_v34 = vpop.eup %825 }
 0x1b9   :  { %545 = vst [vmem:[#allocation8] sm:$0x3] %v826_v34 }
 0x1ba   :  { %556 = dma.vmem_to_hbm [thread:$0]  %s552_s23, 32, %s554_s26, [#allocation4]  }
 0x1bb   :  { %927 = dma.done.wait [#allocation4], 32  }
 0x1bc   :  { %928 = vsyncadd [#allocation4], 4294967264 }
 0x1bd   :  { %561 = vsyncpa [#allocation3], 1 }
 0x1be   :  { %562 = vsyncpa [#allocation6], 1 }
 0x1bf   :  { %563 = vsyncpa [#allocation4], 1 }

</bundles_post_ra>
